<compile_context>
chip_gen: v7x
topology: tpu7x:2x2x1
jax: 0.10.0
libtpu: 0.0.40
codegen_flags: <defaults>
</compile_context>

<pallas_src>
import math

import jax
import jax.numpy as jnp
from jax.experimental import pallas as pl
from jax.experimental.pallas import tpu as pltpu


def _round_up(x, m):
    return ((x + m - 1) // m) * m


# -----------------------------------------------------------------------------
# Kernels
# -----------------------------------------------------------------------------
def _expert_net_single_block_kernel(x_ref, w_ref, b_ref, o_ref):
    # x_ref: (Mp, Kp) bf16, already ReLU'd (Dropout p=0 == identity).
    # w_ref: (Kp, Np) bf16 in MXU-native (K, N) layout.  b_ref: (1, Np) f32.
    o_ref[...] = (
        jnp.dot(x_ref[...], w_ref[...], preferred_element_type=jnp.float32)
        + b_ref[...]
    ).astype(o_ref.dtype)


def _expert_net_tiled_kernel(x_ref, w_ref, b_ref, o_ref):
    # x_ref: (tm, tk) bf16 (ReLU applied in wrapper)   w_ref: (tk, tn) bf16
    # b_ref: (1, tn) f32                               o_ref: (tm, tn) f32
    # The output block index (i, j) is constant across the K (last, arbitrary)
    # grid axis, so o_ref is resident in VMEM and we accumulate into it
    # directly -- no separate accumulator scratch needed.
    k = pl.program_id(2)

    @pl.when(k == 0)
    def _init():
        o_ref[...] = jnp.zeros_like(o_ref)

    # Lane-dense (K, N) RHS: native MXU feed, no per-tile transposes.
    o_ref[...] += jnp.dot(x_ref[...], w_ref[...], preferred_element_type=jnp.float32)

    @pl.when(k == pl.num_programs(2) - 1)
    def _finalize():
        o_ref[...] += b_ref[...]  # bias added once per (i, j) tile


# -----------------------------------------------------------------------------
# Wrapper
# -----------------------------------------------------------------------------
def prepare_expert_params(weight, bias, *, tn_cap=512, tk_cap=1024):
    """One-time weight prep (hoisted out of the per-call hot path).

    weight: (O, F) in PyTorch nn.Linear layout; bias: (O,).
    Returns (w_kn, b_row, meta) where w_kn is the zero-padded bf16 weight in
    MXU-native (Kp, Np) layout and b_row is the padded f32 bias row.
    """
    O, F = weight.shape
    tn_cap = _round_up(tn_cap, 128)
    tk_cap = _round_up(tk_cap, 128)

    Np0 = _round_up(O, 128)
    Kp0 = _round_up(F, 128)
    tn = min(Np0, tn_cap)
    tk = min(Kp0, tk_cap)
    Np = _round_up(Np0, tn)
    Kp = _round_up(Kp0, tk)

    # Transpose to (F, O) = (K, N), cast to bf16, zero-pad: done exactly once.
    w_kn = jnp.pad(weight.astype(jnp.bfloat16).T, ((0, Kp - F), (0, Np - O)))
    b_row = jnp.pad(bias.astype(jnp.float32), (0, Np - O)).reshape(1, Np)
    meta = (O, F, tn, tk)
    return w_kn, b_row, meta


def expert_net_forward(x, w_kn, b_row, meta, *, tm_cap=512):
    """x: (B, F) f32.  Computes Linear(Dropout_{p=0}(ReLU(x))) -> (B, O) f32."""
    O, F, tn, tk = meta
    B, Fx = x.shape
    assert Fx == F, "feature_dim mismatch"
    Kp, Np = w_kn.shape

    # bf16 activation stream -> sublane tile of 16 rows.
    Mp0 = _round_up(B, 16)
    tm = min(Mp0, max(16, _round_up(tm_cap, 16)))
    Mp = _round_up(Mp0, tm)

    # ReLU (Dropout p=0 == identity) + bf16 downcast, fused with the pad: one
    # wrapper-side pass over x; the kernel then streams half the HBM bytes and
    # the value enters the MXU as bf16 either way (numerically identical).
    # TODO(synk): training-mode dropout (p > 0) would need pltpu.prng_seed /
    # prng_random_bits masking inside the kernel.
    xh = jnp.maximum(x, 0.0).astype(jnp.bfloat16)
    xp = jnp.pad(xh, ((0, Mp - B), (0, Kp - F)))

    if Mp <= tm and Np <= tn and Kp <= tk:
        # Single-block fast path: whole arrays in VMEM, no grid / accumulator /
        # pl.when machinery (dominant for tiny experts like B=8, F=32, O=16).
        out_p = pl.pallas_call(
            _expert_net_single_block_kernel,
            out_shape=jax.ShapeDtypeStruct((Mp, Np), jnp.float32),
        )(xp, w_kn, b_row)
        return out_p[:B, :O]

    grid = (Mp // tm, Np // tn, Kp // tk)

    # Double-buffered per-step footprint (bf16 x/w tiles, f32 bias + output),
    # with 2x headroom; clamped under v7x's 64 MiB physical VMEM.
    step_bytes = 2 * (tm * tk * 2 + tk * tn * 2 + tn * 4 + tm * tn * 4)
    vmem_limit = min(48 * 1024 * 1024, max(2 * step_bytes, 16 * 1024 * 1024))

    cost = pl.CostEstimate(
        flops=2 * Mp * Kp * Np,
        transcendentals=0,
        # Account for actual re-streaming: activations once per N tile,
        # weights once per M tile.
        bytes_accessed=(Mp * Kp * 2) * (Np // tn)
        + (Kp * Np * 2) * (Mp // tm)
        + Np * 4
        + Mp * Np * 4,
    )

    out_p = pl.pallas_call(
        _expert_net_tiled_kernel,
        out_shape=jax.ShapeDtypeStruct((Mp, Np), jnp.float32),
        grid_spec=pltpu.PrefetchScalarGridSpec(
            num_scalar_prefetch=0,
            grid=grid,
            in_specs=[
                pl.BlockSpec((tm, tk), lambda i, j, k: (i, k)),  # bf16 activations
                # bf16 weight, MXU-native (K, N) layout.  If a profile shows
                # exposed DMA at large tk, add pipeline_mode=pl.Buffered(3).
                pl.BlockSpec((tk, tn), lambda i, j, k: (k, j)),
                pl.BlockSpec((1, tn), lambda i, j, k: (0, j)),   # f32 bias row
            ],
            out_specs=pl.BlockSpec((tm, tn), lambda i, j, k: (i, j)),
        ),
        compiler_params=pltpu.CompilerParams(
            dimension_semantics=("parallel", "parallel", "arbitrary"),
            vmem_limit_bytes=vmem_limit,
        ),
        cost_estimate=cost,
    )(xp, w_kn, b_row)

    return out_p[:B, :O]


def reference_forward(x, weight, bias):
    # Pure-JAX reference mirroring PyTorch: Linear(Dropout(ReLU(x))) with p=0.
    return jnp.maximum(x, 0.0) @ weight.T + bias


if __name__ == "__main__":
    # --- Small example matching the module (fast single-block path) ----------
    feature_dim, output_dim, batch = 32, 16, 8

    key = jax.random.PRNGKey(0)
    kx, kw, kb = jax.random.split(key, 3)

    x = jax.random.normal(kx, (batch, feature_dim), dtype=jnp.float32)
    bound = 1.0 / math.sqrt(feature_dim)
    weight = jax.random.uniform(
        kw, (output_dim, feature_dim), minval=-bound, maxval=bound, dtype=jnp.float32
    )
    bias = jax.random.uniform(
        kb, (output_dim,), minval=-bound, maxval=bound, dtype=jnp.float32
    )

    # Weight prep (pad + (K,N) transpose + bf16 cast) hoisted out of the hot path.
    w_kn, b_row, meta = prepare_expert_params(weight, bias)
    fwd = jax.jit(lambda x_: expert_net_forward(x_, w_kn, b_row, meta))
    out = jax.block_until_ready(fwd(x))

    ref = reference_forward(x, weight, bias)
    assert out.shape == (batch, output_dim)
    # bf16 activation/weight stream into the MXU (f32 accumulate): ~1e-2 rel err.
    assert jnp.allclose(out, ref, atol=2e-2, rtol=2e-2), "mismatch vs reference (small)"

    # --- Multi-step grid path (forced-small tiles so shapes stay small) ------
    F2, O2, B2 = 320, 256, 48
    k2 = jax.random.PRNGKey(1)
    kx2, kw2, kb2 = jax.random.split(k2, 3)
    x2 = jax.random.normal(kx2, (B2, F2), dtype=jnp.float32)
    b2 = 1.0 / math.sqrt(F2)
    w2 = jax.random.uniform(kw2, (O2, F2), minval=-b2, maxval=b2, dtype=jnp.float32)
    bi2 = jax.random.uniform(kb2, (O2,), minval=-b2, maxval=b2, dtype=jnp.float32)

    w2_kn, b2_row, meta2 = prepare_expert_params(w2, bi2, tn_cap=128, tk_cap=128)
    fwd2 = jax.jit(lambda x_: expert_net_forward(x_, w2_kn, b2_row, meta2, tm_cap=16))
    out2 = jax.block_until_ready(fwd2(x2))

    ref2 = reference_forward(x2, w2, bi2)
    assert out2.shape == (B2, O2)
    assert jnp.allclose(out2, ref2, atol=5e-2, rtol=5e-2), "mismatch vs reference (tiled)"

    print("KERNEL_OK")
</pallas_src>

<mosaic_0001>
module attributes {stable_mosaic.version = 11 : i64} {
  func.func @_expert_net_single_block_kernel(%arg0: memref<16x128xbf16, #tpu.memory_space<vmem>>, %arg1: memref<128x128xbf16, #tpu.memory_space<vmem>>, %arg2: memref<1x128xf32, #tpu.memory_space<vmem>>, %arg3: memref<16x128xf32, #tpu.memory_space<vmem>>) attributes {dimension_semantics = [], scalar_prefetch = 0 : i64, scratch_operands = 0 : i64, tpu.core_type = #tpu.core_type<tc>} {
    %c0 = arith.constant 0 : index
    %c0_0 = arith.constant 0 : index
    %0 = vector.load %arg0[%c0, %c0_0] : memref<16x128xbf16, #tpu.memory_space<vmem>>, vector<16x128xbf16>
    %c0_1 = arith.constant 0 : index
    %c0_2 = arith.constant 0 : index
    %1 = vector.load %arg1[%c0_1, %c0_2] : memref<128x128xbf16, #tpu.memory_space<vmem>>, vector<128x128xbf16>
    %cst = arith.constant dense<0.000000e+00> : vector<16x128xf32>
    %2 = tpu.matmul %0, %1, %cst {dimension_numbers = #tpu.dot_dimension_numbers<[1], [0], [0], [1], [0, 0, 1, 1], [], []>} : vector<16x128xbf16>, vector<128x128xbf16>, vector<16x128xf32> -> vector<16x128xf32>
    %c0_3 = arith.constant 0 : index
    %c0_4 = arith.constant 0 : index
    %3 = vector.load %arg2[%c0_3, %c0_4] : memref<1x128xf32, #tpu.memory_space<vmem>>, vector<1x128xf32>
    %4 = vector.broadcast %3 : vector<1x128xf32> to vector<16x128xf32>
    %5 = arith.addf %2, %4 : vector<16x128xf32>
    %c0_5 = arith.constant 0 : index
    %c0_6 = arith.constant 0 : index
    %6 = vector.load %arg3[%c0_5, %c0_6] : memref<16x128xf32, #tpu.memory_space<vmem>>, vector<16x128xf32>
    tpu.vector_store %arg3[%c0_5, %c0_6], %5 {strides = array<i32>} : memref<16x128xf32, #tpu.memory_space<vmem>>, vector<16x128xf32>,
    return
  }
}

</mosaic_0001>

<bundles_post_ra>
// kernel: _lambda_.1
= control target key start
LH: loop header
LB: loop body
LE: loop exit
PB: predicated region body
PF: predicated region fallthrough
CT: control target
= control target key end

     0   :  { %8 = vsyncpa [#allocation3], 0  ;;  %s233_s12 = smov [#allocation2]   ;;  %s282_s0 = inlined_call_operand.vmem [shape: bf16[16,128], index: 0, kind: input, shape index: {}]   ;;  %s283_s1 = inlined_call_operand.hbm [shape: bf16[128,128], index: 1, kind: input, shape index: {}]   ;;  %s284_s2 = inlined_call_operand.vmem [shape: f32[1,128], index: 2, kind: input, shape index: {}]   ;;  %s285_s3 = inlined_call_operand.vmem [shape: f32[16,128], index: 3, kind: output, shape index: {}]  }
   0x1   :  { %s16_s13 = sshll.u32 %s233_s12, 4  ;;  %s209_s16 = scalar_lea.hbm %s283_s1, 1024  ;;  %s17_s13 = int_to_ptr.vmem [resolvable:$true] %s16_s13 }
   0x2   :  { %p210_p0 = scmp.ne.s32.totalorder %s283_s1, %s209_s16  ;;  %p213_p1 = scmp.lt.u32.totalorder %s209_s16, %s283_s1 }
   0x4   :  { %p215_p2 = pnand %p213_p1, %p210_p0 }
   0x6   :  { %218 = shalt.err (!%p215_p2)
}
   0x7   :  { %s219_s21 = scalar_lea.vmem %s17_s13, 1024  ;;  %p224_p4 = scmp.lt.s32.totalorder %s17_s13, %s17_s13 }
   0x8   :  { %p220_p3 = scmp.ne.s32.totalorder %s17_s13, %s219_s21  ;;  %p225_p5 = scmp.lt.s32.totalorder %s219_s21, %s219_s21 }
   0xa   :  { %p226_p6 = por %p225_p5, %p224_p4 }
   0xc   :  { %p227_p7 = pnand %p226_p6, %p220_p3 }
   0xe   :  { %230 = shalt.err (!%p227_p7)
}
   0xf   :  { %s234_s22 = smov 64   ;;  %s235_s23 = smov 4  }
  0x10   :  { %22 = dma.hbm_to_vmem [thread:$0]  %s283_s1, 1024, %s17_s13, [#allocation3], %s234_s22, %s234_s22, %s235_s23  }
  0x11   :  { %231 = dma.done.wait [#allocation3], 1024  }
  0x12   :  { %232 = vsyncadd [#allocation3], 4294966272  ;;  %v236_v0 = vmov 0.0   ;;  %vm237_vm0 = vmmov 0   ;;  %v200_v1 = vld [vmem:[#allocation2] sm:$0xff]   ;;  %v201_v2 = vld [vmem:[#allocation2 + $0x8] sm:$0xff]  }
  0x13   :  { %175 = vmatprep.subr.bf16.mxu0 %v236_v0  ;;  %191 = vmatprep.mubr.msk.bf16.mxu0 %vm237_vm0, %v236_v0  ;;  %v202_v3 = vld [vmem:[#allocation2 + $0x10] sm:$0xff]   ;;  %v203_v4 = vld [vmem:[#allocation2 + $0x18] sm:$0xff]   ;;  %v204_v5 = vld [vmem:[#allocation2 + $0x20] sm:$0xff]  }
  0x14   :  { %176 = vmatpush3.bf16.msra.mxu0 %v200_v1  ;;  %v205_v6 = vld [vmem:[#allocation2 + $0x28] sm:$0xff]   ;;  %v206_v7 = vld [vmem:[#allocation2 + $0x30] sm:$0xff]   ;;  %v207_v8 = vld [vmem:[#allocation2 + $0x38] sm:$0xff]  }
  0x15   :  { %177 = vmatprep.subr.bf16.mxu0 %v236_v0  ;;  %v208_v9 = vld [vmem:[%s282_s0] sm:$0xff]  }
  0x16   :  { %v156_v10 = vld [vmem:[%s284_s2] ss:$0 sm:$0xff] }
  0x18   :  { %178 = vmatpush3.bf16.msra.mxu0 %v201_v2 }
  0x19   :  { %179 = vmatprep.subr.bf16.mxu0 %v236_v0 }
  0x1c   :  { %180 = vmatpush3.bf16.msra.mxu0 %v202_v3 }
  0x1d   :  { %181 = vmatprep.subr.bf16.mxu0 %v236_v0 }
  0x20   :  { %182 = vmatpush3.bf16.msra.mxu0 %v203_v4 }
  0x21   :  { %183 = vmatprep.subr.bf16.mxu0 %v236_v0 }
  0x24   :  { %184 = vmatpush3.bf16.msra.mxu0 %v204_v5 }
  0x25   :  { %185 = vmatprep.subr.bf16.mxu0 %v236_v0 }
  0x28   :  { %186 = vmatpush3.bf16.msra.mxu0 %v205_v6 }
  0x29   :  { %187 = vmatprep.subr.bf16.mxu0 %v236_v0 }
  0x2c   :  { %188 = vmatpush3.bf16.msra.mxu0 %v206_v7 }
  0x2d   :  { %189 = vmatprep.subr.bf16.mxu0 %v236_v0 }
  0x30   :  { %190 = vmatpush3.bf16.msra.mxu0 %v207_v8 }
  0x33   :  { %192 = vmatmul.mubr.bf16.vlgmr.msra.gmra.mrb[0].mxu0 %v208_v9 }
 0x106   :  { %v142_v11 = vpop.f32.mrb[0].mxu0 }
 0x107   :  { %v143_v12 = vadd.f32 %v156_v10, %v142_v11  ;;  %v193_v13 = vpop.f32.mrb[1].mxu0 }
 0x108   :  { %v145_v14 = vpop.f32.mrb[2].mxu0 }
 0x109   :  { %149 = vst [vmem:[%s285_s3] sm:$0xff] %v143_v12  ;;  %v146_v15 = vadd.f32 %v156_v10, %v145_v14  ;;  %v194_v16 = vpop.f32.mrb[3].mxu0 }
 0x10b   :  { %150 = vst [vmem:[%s285_s3 + $0x8] sm:$0xff] %v146_v15 }
 0x10c   :  { %155 = vsyncpa [#allocation3], 1 }

</bundles_post_ra>
